<compile_context>
chip_gen: v6e
topology: v6e:2x2x1
jax: 0.10.0
libtpu: 0.0.40
codegen_flags: <defaults>
</compile_context>

<pallas_src>
import functools

import jax
import jax.numpy as jnp
from jax.experimental import pallas as pl
from jax.experimental.pallas import tpu as pltpu

LANES = 128                       # vreg lane width (last dim)
ACC_ROWS = 256                    # fixed accumulator rows (256 x 128 f32 = 128 KiB)
TARGET_STEP_BYTES = 8 * 1024 * 1024   # HBM bytes per grid step (both inputs combined)


def _sublane_align(dtype) -> int:
    """Second-minor block alignment: 8 for 4-byte, 16 for 2-byte, 32 for 1-byte."""
    return max(8, 32 // jnp.dtype(dtype).itemsize)


def _round_up(x: int, m: int) -> int:
    return ((x + m - 1) // m) * m


def _tensorcores_per_chip() -> int:
    """2 TensorCores per chip on v7x, 1 on v5e/v6e (conservative default 1)."""
    try:
        kind = jax.devices()[0].device_kind.lower()
    except Exception:
        return 1
    return 2 if "v7" in kind else 1


def _mse_partial_kernel(x_ref, y_ref, out_ref, acc_ref, *,
                        tiles_per_core, tile_rows, acc_rows, valid_rows,
                        needs_mask):
    """Per-core partial sum of (x - y)^2 over this core's slice of row tiles."""
    i = pl.program_id(1)  # reduction ("arbitrary") axis

    @pl.when(i == 0)
    def _():
        acc_ref[...] = jnp.zeros_like(acc_ref)

    groups = tile_rows // acc_rows

    def accumulate(masked, row_base=None):
        if masked:
            # Hoisted once per tile (JAX does not CSE iota/broadcasts).
            base_iota = jax.lax.broadcasted_iota(jnp.int32, (acc_rows, LANES), 0)
        for g in range(groups):
            r0 = g * acc_rows
            xg = x_ref[r0:r0 + acc_rows, :].astype(jnp.float32)
            yg = y_ref[r0:r0 + acc_rows, :].astype(jnp.float32)
            d = xg - yg
            if masked:
                # Mask d (pre-square) so garbage rows of a partial edge block
                # (possibly NaN/Inf) contribute exactly zero.
                row_ids = row_base + r0 + base_iota
                d = jnp.where(row_ids < valid_rows, d, 0.0)
            # Pure VPU accumulate into the fixed-size VMEM accumulator.
            acc_ref[...] += d * d

    if needs_mask:
        c = pl.program_id(0)
        tile_id = c * tiles_per_core + i          # logical (unclamped) tile index
        row_base = tile_id * tile_rows
        tile_overruns = row_base + tile_rows > valid_rows

        @pl.when(tile_overruns)
        def _():
            accumulate(masked=True, row_base=row_base)

        @pl.when(jnp.logical_not(tile_overruns))
        def _():
            accumulate(masked=False)
    else:
        accumulate(masked=False)

    @pl.when(i == pl.num_programs(1) - 1)
    def _():
        out_ref[0, 0] = jnp.sum(acc_ref[...])   # single cross-lane reduce per core


def mse_loss(x, y):
    """Pallas equivalent of My_loss().forward(x, y) == mean((x - y)**2)."""
    assert x.shape == y.shape, "x and y must have the same shape"
    n_elems = x.size
    assert n_elems > 0, "empty input"
    assert n_elems < (1 << 37), "int32 row indexing inside the kernel would overflow"

    out_dtype = jnp.result_type(x.dtype, y.dtype)

    xf = jnp.ravel(x)
    yf = jnp.ravel(y)

    rows = n_elems // LANES
    n_main = rows * LANES

    if n_main < n_elems:
        # Sub-lane-width tail (< 128 elements): fold in with plain JAX.
        # NOTE: only for n % 128 != 0 does the xf[:n_main] slice below
        # materialize a copy of the main body; the common multiple-of-128
        # case (including the demo) is a free reshape with no copies.
        dt = xf[n_main:].astype(jnp.float32) - yf[n_main:].astype(jnp.float32)
        tail_sum = jnp.sum(dt * dt)
        x_main, y_main = xf[:n_main], yf[:n_main]
    else:
        tail_sum = jnp.float32(0.0)
        x_main, y_main = xf, yf

    if rows == 0:  # everything fit in the tail
        return (tail_sum / n_elems).astype(out_dtype)

    x2d = x_main.reshape(rows, LANES)
    y2d = y_main.reshape(rows, LANES)

    align = max(_sublane_align(x.dtype), _sublane_align(y.dtype))

    # Bytes-based block sizing (~TARGET_STEP_BYTES of HBM traffic per step).
    bytes_per_row = LANES * (jnp.dtype(x.dtype).itemsize + jnp.dtype(y.dtype).itemsize)
    cap_rows = max(ACC_ROWS,
                   (TARGET_STEP_BYTES // bytes_per_row) // ACC_ROWS * ACC_ROWS)

    if rows >= ACC_ROWS:
        acc_rows = ACC_ROWS
        tile_rows = min(cap_rows, _round_up(rows, ACC_ROWS))
    else:
        tile_rows = _round_up(rows, align)   # small input: one short tile
        acc_rows = tile_rows

    num_tiles = pl.cdiv(rows, tile_rows)
    # Core split only where it helps: 2-way only on multi-TC chips AND when
    # there are at least 2 tiles to split.
    cores = max(1, min(_tensorcores_per_chip(), num_tiles))
    tiles_per_core = pl.cdiv(num_tiles, cores)
    # Grid over-covers when rows doesn't split evenly; extra tiles are masked.
    needs_mask = (cores * tiles_per_core * tile_rows) != rows

    def in_map(c, i):
        # Clamp so over-covering tiles re-read a valid tile (their contribution
        # is zeroed by the in-kernel mask) — never DMA out of bounds.
        return (jnp.minimum(c * tiles_per_core + i, num_tiles - 1), 0)

    kernel = functools.partial(
        _mse_partial_kernel,
        tiles_per_core=tiles_per_core,
        tile_rows=tile_rows,
        acc_rows=acc_rows,
        valid_rows=rows,
        needs_mask=needs_mask,
    )

    bytes_in = (x2d.size * x2d.dtype.itemsize + y2d.size * y2d.dtype.itemsize)
    cost = pl.CostEstimate(flops=3 * n_main, transcendentals=0,
                           bytes_accessed=bytes_in + 4 * cores)

    partial = pl.pallas_call(
        kernel,
        out_shape=jax.ShapeDtypeStruct((cores, 1), jnp.float32),
        grid_spec=pltpu.PrefetchScalarGridSpec(
            num_scalar_prefetch=0,
            grid=(cores, tiles_per_core),
            in_specs=[
                pl.BlockSpec((tile_rows, LANES), in_map),
                pl.BlockSpec((tile_rows, LANES), in_map),
            ],
            out_specs=pl.BlockSpec((1, 1), lambda c, i: (c, 0),
                                   memory_space=pltpu.SMEM),
            scratch_shapes=[pltpu.VMEM((acc_rows, LANES), jnp.float32)],
        ),
        compiler_params=pltpu.CompilerParams(
            dimension_semantics=("parallel", "arbitrary"),
            vmem_limit_bytes=32 * 1024 * 1024,
        ),
        cost_estimate=cost,
    )(x2d, y2d)

    # Combine per-core partial sums (and tail) and apply the mean divide.
    result = (jnp.sum(partial) + tail_sum) / n_elems
    return result.astype(out_dtype)


if __name__ == "__main__":
    key = jax.random.PRNGKey(0)
    kx, ky = jax.random.split(key)
    # Small NCHW-like shapes consistent with a generic loss input.
    x = jax.random.normal(kx, (2, 4, 16, 16), dtype=jnp.float32)
    y = jax.random.normal(ky, (2, 4, 16, 16), dtype=jnp.float32)

    loss = mse_loss(x, y)
    jax.block_until_ready(loss)

    # Sanity check against plain JAX reference.
    ref = jnp.mean((x - y) ** 2)
    assert jnp.allclose(loss, ref, rtol=1e-5, atol=1e-6), (loss, ref)

    print("KERNEL_OK")
</pallas_src>

<mosaic_0001>
module attributes {stable_mosaic.version = 11 : i64} {
  func.func @_mse_partial_kernel(%arg0: i32, %arg1: i32, %arg2: memref<16x128xf32, #tpu.memory_space<vmem>>, %arg3: memref<16x128xf32, #tpu.memory_space<vmem>>, %arg4: memref<1x1xf32, #tpu.memory_space<smem>>, %arg5: memref<16x128xf32, #tpu.memory_space<vmem>>) attributes {dimension_semantics = [#tpu.dimension_semantics<parallel>, #tpu.dimension_semantics<arbitrary>], iteration_bounds = array<i64: 1, 1>, scalar_prefetch = 0 : i64, scratch_operands = 1 : i64, tpu.core_type = #tpu.core_type<tc>, window_params = [{transform_indices = @transform_0, window_bounds = array<i64: 16, 128>}, {transform_indices = @transform_1, window_bounds = array<i64: 16, 128>}, {transform_indices = @transform_2, window_bounds = array<i64: 1, 1>}]} {
    %c0_i32 = arith.constant 0 : i32
    %0 = arith.cmpi eq, %arg1, %c0_i32 : i32
    %1 = arith.extui %0 : i1 to i32
    %c0_i32_0 = arith.constant 0 : i32
    %2 = arith.cmpi ne, %1, %c0_i32_0 : i32
    scf.if %2 {
      %cst = arith.constant 0.000000e+00 : f32
      %13 = vector.broadcast %cst : f32 to vector<16x128xf32>
      %c0_10 = arith.constant 0 : index
      %c0_11 = arith.constant 0 : index
      %14 = vector.load %arg5[%c0_10, %c0_11] : memref<16x128xf32, #tpu.memory_space<vmem>>, vector<16x128xf32>
      tpu.vector_store %arg5[%c0_10, %c0_11], %13 {strides = array<i32>} : memref<16x128xf32, #tpu.memory_space<vmem>>, vector<16x128xf32>,
    } else {
    }
    %c0 = arith.constant 0 : index
    %c0_1 = arith.constant 0 : index
    %3 = vector.load %arg2[%c0, %c0_1] : memref<16x128xf32, #tpu.memory_space<vmem>>, vector<16x128xf32>
    %c0_2 = arith.constant 0 : index
    %c0_3 = arith.constant 0 : index
    %4 = vector.load %arg3[%c0_2, %c0_3] : memref<16x128xf32, #tpu.memory_space<vmem>>, vector<16x128xf32>
    %5 = arith.subf %3, %4 : vector<16x128xf32>
    %c0_4 = arith.constant 0 : index
    %c0_5 = arith.constant 0 : index
    %6 = vector.load %arg5[%c0_4, %c0_5] : memref<16x128xf32, #tpu.memory_space<vmem>>, vector<16x128xf32>
    %7 = arith.mulf %5, %5 : vector<16x128xf32>
    %8 = arith.addf %6, %7 : vector<16x128xf32>
    %c0_6 = arith.constant 0 : index
    %c0_7 = arith.constant 0 : index
    %9 = vector.load %arg5[%c0_6, %c0_7] : memref<16x128xf32, #tpu.memory_space<vmem>>, vector<16x128xf32>
    tpu.vector_store %arg5[%c0_6, %c0_7], %8 {strides = array<i32>} : memref<16x128xf32, #tpu.memory_space<vmem>>, vector<16x128xf32>,
    %c0_i32_8 = arith.constant 0 : i32
    %10 = arith.cmpi eq, %arg1, %c0_i32_8 : i32
    %11 = arith.extui %10 : i1 to i32
    %c0_i32_9 = arith.constant 0 : i32
    %12 = arith.cmpi ne, %11, %c0_i32_9 : i32
    scf.if %12 {
      %c0_10 = arith.constant 0 : index
      %c0_11 = arith.constant 0 : index
      %13 = vector.load %arg5[%c0_10, %c0_11] : memref<16x128xf32, #tpu.memory_space<vmem>>, vector<16x128xf32>
      %14 = vector.shape_cast %13 : vector<16x128xf32> to vector<1x16x128xf32>
      %cst = arith.constant dense<0.000000e+00> : vector<1xf32>
      %15 = vector.multi_reduction <add>, %14, %cst [1, 2] : vector<1x16x128xf32> to vector<1xf32>
      %16 = vector.shape_cast %15 : vector<1xf32> to vector<1x1x1xf32>
      %17 = vector.extract %16[0, 0, 0] : f32 from vector<1x1x1xf32>
      %c0_12 = arith.constant 0 : index
      %c0_13 = arith.constant 0 : index
      %18 = memref.load %arg4[%c0_12, %c0_13] : memref<1x1xf32, #tpu.memory_space<smem>>
      memref.store %17, %arg4[%c0_12, %c0_13] : memref<1x1xf32, #tpu.memory_space<smem>>
    } else {
    }
    return
  }
  func.func @transform_0(%arg0: i32, %arg1: i32) -> (i32, i32) {
    %c1_i32 = arith.constant 1 : i32
    %0 = arith.muli %arg0, %c1_i32 : i32
    %1 = arith.addi %0, %arg1 : i32
    %c0_i32 = arith.constant 0 : i32
    %2 = arith.minsi %1, %c0_i32 : i32
    %c0_i32_0 = arith.constant 0 : i32
    %c0_i32_1 = arith.constant 0 : i32
    return %2, %c0_i32_0 : i32, i32
  }
  func.func @transform_1(%arg0: i32, %arg1: i32) -> (i32, i32) {
    %c1_i32 = arith.constant 1 : i32
    %0 = arith.muli %arg0, %c1_i32 : i32
    %1 = arith.addi %0, %arg1 : i32
    %c0_i32 = arith.constant 0 : i32
    %2 = arith.minsi %1, %c0_i32 : i32
    %c0_i32_0 = arith.constant 0 : i32
    %c0_i32_1 = arith.constant 0 : i32
    return %2, %c0_i32_0 : i32, i32
  }
  func.func @transform_2(%arg0: i32, %arg1: i32) -> (i32, i32) {
    %c0_i32 = arith.constant 0 : i32
    %c0_i32_0 = arith.constant 0 : i32
    return %arg0, %c0_i32 : i32, i32
  }
}

</mosaic_0001>

<bundles_post_ra>
// kernel: tpu_custom_call.1
= control target key start
LH: loop header
LB: loop body
LE: loop exit
PB: predicated region body
PF: predicated region fallthrough
CT: control target
= control target key end

     0   :  { %7 = vsyncpa [#allocation4], 0  ;;  %s206_s0 = inlined_call_operand.hbm [shape: f32[16,128], index: 0, kind: input, shape index: {}]   ;;  %s207_s1 = inlined_call_operand.hbm [shape: f32[16,128], index: 1, kind: input, shape index: {}]   ;;  %s208_s2 = inlined_call_operand.hbm [shape: f32[1,1], index: 2, kind: output, shape index: {}]  }
   0x1   :  { %8 = vsyncpa [#allocation7], 0 }
   0x2   :  { %9 = vsyncpa [#allocation5], 0  ;;  %s177_s9 = smov [#allocation3]  }
   0x3   :  { %s21_s10 = sshll.u32 %s177_s9, 4  ;;  %s22_s10 = int_to_ptr.vmem [resolvable:$true] %s21_s10 }
   0x4   :  { %s131_s11 = scalar_lea.vmem %s22_s10, 256  ;;  %p136_p1 = scmp.lt.s32.totalorder %s22_s10, %s22_s10 }
   0x5   :  { %p132_p0 = scmp.ne.s32.totalorder %s22_s10, %s131_s11  ;;  %p137_p2 = scmp.lt.s32.totalorder %s131_s11, %s131_s11 }
   0x7   :  { %p138_p3 = por %p137_p2, %p136_p1 }
   0x9   :  { %p139_p4 = pnand %p138_p3, %p132_p0 }
   0xb   :  { %142 = shalt.err (!%p139_p4)
}
   0xc   :  { %s178_s12 = smov 128   ;;  %s179_s13 = smov 8  }
   0xd   :  { %27 = dma.hbm_to_vmem [thread:$0]  %s206_s0, 256, %s22_s10, [#allocation4], %s178_s12, %s178_s12, %s179_s13  }
   0xe   :  { %s180_s16 = smov [#allocation6]  }
   0xf   :  { %s39_s17 = sshll.u32 %s180_s16, 4  ;;  %s40_s17 = int_to_ptr.vmem [resolvable:$true] %s39_s17 }
  0x10   :  { %s151_s18 = scalar_lea.vmem %s40_s17, 256  ;;  %p156_p6 = scmp.lt.s32.totalorder %s40_s17, %s40_s17 }
  0x11   :  { %p152_p5 = scmp.ne.s32.totalorder %s40_s17, %s151_s18  ;;  %p157_p7 = scmp.lt.s32.totalorder %s151_s18, %s151_s18 }
  0x13   :  { %p158_p8 = por %p157_p7, %p156_p6 }
  0x15   :  { %p159_p9 = pnand %p158_p8, %p152_p5 }
  0x17   :  { %162 = shalt.err (!%p159_p9)
}
  0x18   :  { %45 = dma.hbm_to_vmem [thread:$0]  %s207_s1, 256, %s40_s17, [#allocation7], %s178_s12, %s178_s12, %s179_s13  }
  0x19   :  { %171 = dma.done.wait [#allocation4], 256  }
  0x1a   :  { %172 = vsyncadd [#allocation4], 4294967040 }
  0x1b   :  { %173 = dma.done.wait [#allocation7], 256  }
  0x1c   :  { %174 = vsyncadd [#allocation7], 4294967040  ;;  %v66_v0 = vld [vmem:[#allocation3] sm:$0xff]  ;;  %v67_v1 = vld [vmem:[#allocation3 + $0x8] sm:$0xff]  ;;  %s181_s1 = smov [#allocation8]  }
  0x1d   :  { %v68_v2 = vld [vmem:[#allocation6] sm:$0xff]  ;;  %v69_v3 = vld [vmem:[#allocation6 + $0x8] sm:$0xff] }
  0x1e   :  { %v70_v4 = vsub.f32 %v66_v0, %v68_v2  ;;  %v71_v5 = vsub.f32 %v67_v1, %v69_v3 }
  0x20   :  { %v74_v6 = vmul.f32 %v70_v4, %v70_v4  ;;  %v75_v7 = vmul.f32 %v71_v5, %v71_v5 }
  0x22   :  { %v85_v8 = vadd.f32 %v75_v7, %v74_v6 }
  0x24   :  { %86 = vadd.xlane.f32.xlu0 %v85_v8 }
  0xad   :  { %v87_v9 = vpop.xlane.xlu0 %86 }
  0xae   :  { %v88_v10 = vrot.slane %v87_v9, 4 }
  0xb0   :  { %v89_v11 = vadd.f32 %v88_v10, %v87_v9 }
  0xb2   :  { %v90_v12 = vrot.slane %v89_v11, 2 }
  0xb4   :  { %v91_v13 = vadd.f32 %v90_v12, %v89_v11 }
  0xb6   :  { %v92_v14 = vrot.slane %v91_v13, 1 }
  0xb8   :  { %v93_v15 = vadd.f32 %v92_v14, %v91_v13 }
  0xba   :  { %116 = vpush %v93_v15 }
  0xeb   :  { %s117_s0 = spop %116 }
  0xec   :  { %96 = sst [smem:[#allocation8]] %s117_s0 }
  0xed   :  { %104 = dma.smem_to_hbm %s181_s1, 16, %s208_s2, [#allocation5]  }
  0xee   :  { %175 = dma.done.wait [#allocation5], 16  }
  0xef   :  { %176 = vsyncadd [#allocation5], 4294967280 }
  0xf0   :  { %108 = sfence }
  0xf1   :  { %109 = vsyncpa [#allocation4], 1 }
  0xf2   :  { %110 = vsyncpa [#allocation7], 1 }
  0xf3   :  { %111 = vsyncpa [#allocation5], 1 }

</bundles_post_ra>
